<compile_context>
chip_gen: v5e
topology: v5e:2x2
jax: 0.10.0
libtpu: 0.0.40
codegen_flags: <defaults>
</compile_context>

<pallas_src>
import functools

import jax
import jax.numpy as jnp
from jax.experimental import pallas as pl
from jax.experimental.pallas import tpu as pltpu

# scale_factor == 2 branch of the PyTorch module.
KERNEL, STRIDE, PAD = 6, 2, 2

WEIGHT_ORDER = (
    "feat0", "feat1",
    "up1_1", "up1_2", "up1_3",
    "down1_1", "down1_2", "down1_3",
    "up2_1", "up2_2", "up2_3",
    "down2_c", "down2_1", "down2_2", "down2_3",
    "up3_c", "up3_1", "up3_2", "up3_3",
    "out",
)
LAYER_KIND = {
    "feat0": "conv3x3", "feat1": "conv1x1",
    "up1_1": "deconv", "up1_2": "conv_s2", "up1_3": "deconv",
    "down1_1": "conv_s2", "down1_2": "deconv", "down1_3": "conv_s2",
    "up2_1": "deconv", "up2_2": "conv_s2", "up2_3": "deconv",
    "down2_c": "conv1x1", "down2_1": "conv_s2", "down2_2": "deconv", "down2_3": "conv_s2",
    "up3_c": "conv1x1", "up3_1": "deconv", "up3_2": "conv_s2", "up3_3": "deconv",
    "out": "conv3x3",
}
ALPHA_IDX = {name: i for i, name in enumerate(WEIGHT_ORDER[:-1])}   # output_conv has no PReLU


def _ru(x, m):
    return ((x + m - 1) // m) * m


# --------------------------------------------------------------------------- roll probe
_ROLL_LIKE_JNP = None


def _detect_roll_direction():
    """One-time eager probe of pltpu.roll's rotation direction (defensive)."""
    global _ROLL_LIKE_JNP
    if _ROLL_LIKE_JNP is None:
        def k(x_ref, o_ref):
            o_ref[...] = pltpu.roll(x_ref[...], 1, axis=1)

        x = jnp.tile(jax.lax.iota(jnp.float32, 128)[None, :], (8, 1))
        y = pl.pallas_call(k, out_shape=jax.ShapeDtypeStruct((8, 128), jnp.float32))(x)
        if bool(jnp.array_equal(y, jnp.roll(x, 1, axis=1))):
            _ROLL_LIKE_JNP = True
        elif bool(jnp.array_equal(y, jnp.roll(x, -1, axis=1))):
            _ROLL_LIKE_JNP = False
        else:
            raise RuntimeError("unexpected pltpu.roll semantics")
    return _ROLL_LIKE_JNP


# --------------------------------------------------------------------------- fused kernel
def _make_kernel(N, H, W, bf, num_stages):
    """Whole-network kernel.  Activation layout: (C, N*H*W) f32, spatial on lanes.
    HR (2x) tensors are carried as 4 LR-sized phase planes, p = 2*py + px."""
    M = N * H * W
    roll_like_jnp = _ROLL_LIKE_JNP if _ROLL_LIKE_JNP is not None else True

    def kernel(alpha_ref, x_ref, *rest):
        wref = dict(zip(WEIGHT_ORDER, rest[:len(WEIGHT_ORDER)]))
        out_ref = rest[len(WEIGHT_ORDER)]

        # Border masks for the 8 non-centre 3x3 taps (built once, reused everywhere).
        lane = jax.lax.broadcasted_iota(jnp.int32, (1, M), 1)
        yy = (lane // W) % H
        xx = lane % W
        masks = {}
        for dy in (-1, 0, 1):
            for dx in (-1, 0, 1):
                if (dy, dx) == (0, 0):
                    continue
                ok = (yy + dy >= 0) & (yy + dy < H) & (xx + dx >= 0) & (xx + dx < W)
                masks[(dy, dx)] = ok.astype(jnp.float32)
        # 8-row bias block: first row ones (matches the bias column folded into weights).
        ones_blk = (jax.lax.broadcasted_iota(jnp.int32, (8, M), 0) == 0).astype(jnp.float32)

        def tap(x, dy, dx):
            """x spatially shifted by (dy, dx), zero outside the image (lane roll + mask)."""
            if (dy, dx) == (0, 0):
                return x
            off = dy * W + dx
            amt = (-off) % M if roll_like_jnp else off % M
            return pltpu.roll(x, amt, axis=1) * masks[(dy, dx)]

        def gemm(name, patch):
            acc = jnp.dot(wref[name][...], patch, preferred_element_type=jnp.float32)
            if name != "out":                                     # fused PReLU epilogue
                a = alpha_ref[ALPHA_IDX[name]]
                acc = jnp.where(acc > 0, acc, a * acc)
            return acc

        def patch3(x):                                            # 3x3 / stride 1 / pad 1
            rows = [tap(x, dy, dx) for dy in (-1, 0, 1) for dx in (-1, 0, 1)]
            return jnp.concatenate(rows + [ones_blk], axis=0)

        def conv3x3(name, x):
            return gemm(name, patch3(x))

        def conv1x1(name, x):
            return gemm(name, jnp.concatenate([x, ones_blk], axis=0))

        def deconv(name, x):                                      # ConvT 6/2/2, polyphase
            big = gemm(name, patch3(x))                           # (4*bf, M)
            return [big[p * bf:(p + 1) * bf, :] for p in range(4)]

        def conv_s2(name, hr):                                    # Conv 6/2/2, phase form
            rows = []
            for p in range(4):
                rows += [tap(hr[p], dy, dx) for dy in (-1, 0, 1) for dx in (-1, 0, 1)]
            return gemm(name, jnp.concatenate(rows + [ones_blk], axis=0))

        def up_block(pre, x):                                     # x: LR (C, M)
            h0 = deconv(pre + "1", x)
            l0 = conv_s2(pre + "2", h0)
            h1 = deconv(pre + "3", l0 - x)
            return [a + b for a, b in zip(h1, h0)]

        def down_block(pre, hr):                                  # hr: 4 phase planes
            l0 = conv_s2(pre + "1", hr)
            h0 = deconv(pre + "2", l0)
            l1 = conv_s2(pre + "3", [a - b for a, b in zip(h0, hr)])
            return l1 + l0

        # ------------------------------------------------------------------- forward
        xf = conv3x3("feat0", x_ref[...])
        l = conv1x1("feat1", xf)
        results = []
        for _ in range(num_stages):
            h1 = up_block("up1_", l)
            l1 = down_block("down1_", h1)
            h2 = up_block("up2_", l1)
            concat_h = [jnp.concatenate([a, b], axis=0) for a, b in zip(h2, h1)]
            l = down_block("down2_", [conv1x1("down2_c", p) for p in concat_h])
            concat_l = jnp.concatenate([l, l1], axis=0)
            h = up_block("up3_", conv1x1("up3_c", concat_l))
            results.append(h)
        res = [jnp.concatenate([r[p] for r in results], axis=0) for p in range(4)]

        # output_conv: 3x3/s1/p1 at HR, evaluated per output phase from the phase planes.
        out_phases = []
        for qy in (0, 1):
            for qx in (0, 1):
                rows = []
                for dy in (-1, 0, 1):
                    ry, sy = (qy + dy) % 2, (qy + dy) // 2
                    for dx in (-1, 0, 1):
                        rx, sx = (qx + dx) % 2, (qx + dx) // 2
                        rows.append(tap(res[ry * 2 + rx], sy, sx))
                out_phases.append(gemm("out", jnp.concatenate(rows + [ones_blk], axis=0)))
        out_ref[...] = jnp.concatenate(out_phases, axis=1)        # lane-dense (Co_pad, 4*M)

    return kernel


# --------------------------------------------------------------------------- Net.forward
def net_forward(params, x_nchw, *, num_stages, num_channels, base_filter):
    N, C, H, W = x_nchw.shape
    cin_pad = _ru(C, 8)
    co_pad = _ru(num_channels, 8)
    M = N * H * W

    x = jnp.transpose(x_nchw.astype(jnp.float32), (1, 0, 2, 3))   # (C, N, H, W)
    if cin_pad != C:
        x = jnp.pad(x, ((0, cin_pad - C), (0, 0), (0, 0), (0, 0)))
    x_flat = x.reshape(cin_pad, M)

    kernel = _make_kernel(N, H, W, base_filter, num_stages)
    out = pl.pallas_call(
        kernel,
        out_shape=jax.ShapeDtypeStruct((co_pad, 4 * M), jnp.float32),
        in_specs=[pl.BlockSpec(memory_space=pltpu.MemorySpace.SMEM)]
        + [pl.BlockSpec(memory_space=pltpu.MemorySpace.VMEM)] * (1 + len(WEIGHT_ORDER)),
        out_specs=pl.BlockSpec(memory_space=pltpu.MemorySpace.VMEM),
    )(params["alphas"], x_flat, *params["weights"])

    # HR phase interleave + channel un-padding: the only XLA glue left, at the boundary.
    out6 = out.reshape(co_pad, 2, 2, N, H, W)[:num_channels]      # (c, py, px, n, t, u)
    return jnp.transpose(out6, (3, 0, 4, 1, 5, 2)).reshape(N, num_channels, 2 * H, 2 * W)


# --------------------------------------------------------------------------- weight repack
def _pad_rows(m, mult=8):
    r = m.shape[0]
    rp = _ru(r, mult)
    return m if rp == r else jnp.pad(m, ((0, rp - r), (0, 0)))


def _prep_conv3x3(p, cin_real, cin_pad):
    """Conv2d 3x3/s1/p1 (Co,Ci,3,3) -> (ru(Co,8), 9*cin_pad + 8), bias folded."""
    w, b = jnp.asarray(p["w"], jnp.float32), jnp.asarray(p["b"], jnp.float32)
    Co = w.shape[0]
    taps = jnp.zeros((Co, 9, cin_pad), jnp.float32)
    taps = taps.at[:, :, :cin_real].set(jnp.transpose(w.reshape(Co, cin_real, 9), (0, 2, 1)))
    wm = jnp.concatenate(
        [taps.reshape(Co, 9 * cin_pad), b[:, None], jnp.zeros((Co, 7), jnp.float32)], axis=1)
    return _pad_rows(wm)


def _prep_conv1x1(p):
    w, b = jnp.asarray(p["w"], jnp.float32), jnp.asarray(p["b"], jnp.float32)
    Co, Ci = w.shape[:2]
    wm = jnp.concatenate(
        [w.reshape(Co, Ci), b[:, None], jnp.zeros((Co, 7), jnp.float32)], axis=1)
    return _pad_rows(wm)


def _prep_conv_s2(p):
    """Conv2d 6x6/s2/p2 (Co,Ci,6,6) -> (ru(Co,8), 36*Ci + 8).  Column blocks ordered
    (HR input phase p=2*py+px, tap (dy,dx), ci): the 3x3 stride-1 conv that the
    stride-2 conv reduces to on each input phase plane (weight tap ky = 2*dy+2+py)."""
    w, b = jnp.asarray(p["w"], jnp.float32), jnp.asarray(p["b"], jnp.float32)
    Co, Ci = w.shape[:2]
    mats = []
    for py in (0, 1):
        for px in (0, 1):
            sub = w[:, :, py::2, px::2].reshape(Co, Ci, 9)        # slot a <-> dy = a - 1
            mats.append(jnp.transpose(sub, (0, 2, 1)).reshape(Co, 9 * Ci))
    wm = jnp.concatenate(mats + [b[:, None], jnp.zeros((Co, 7), jnp.float32)], axis=1)
    return _pad_rows(wm)


def _prep_deconv(p):
    """ConvTranspose2d 6x6/s2/p2 (Ci,Co,6,6) -> (4*Co, 9*Ci + 8).  Row blocks are the
    4 HR output phases; phase (py,px) is a 3x3 stride-1 conv of the LR input with
    taps w[:, :, py+2-2*dy, px+2-2*dx]; bias folded."""
    w, b = jnp.asarray(p["w"], jnp.float32), jnp.asarray(p["b"], jnp.float32)
    Ci, Co = w.shape[:2]
    assert Co % 8 == 0, "TODO(synk): pad per-phase rows for Co % 8 != 0"
    mats = []
    for py in (0, 1):
        for px in (0, 1):
            sub = w[:, :, py + 4::-2, px + 4::-2]                 # (Ci,Co,3,3), slot a <-> dy=a-1
            mats.append(jnp.transpose(sub, (1, 2, 3, 0)).reshape(Co, 9 * Ci))
    wm = jnp.concatenate(mats, axis=0)                            # (4*Co, 9*Ci)
    return jnp.concatenate(
        [wm, jnp.tile(b, 4)[:, None], jnp.zeros((4 * Co, 7), jnp.float32)], axis=1)


def _leaf(raw, name):
    if name == "out":
        return raw["output_conv"]
    if name in ("feat0", "feat1"):
        return raw[name]
    blk, idx = name.split("_")
    if idx == "c":
        return raw[blk]["conv"]
    kind = "up" if blk.startswith("up") else "down"
    return raw[blk][kind + idx]


def prepare_params(raw, *, num_channels, base_filter, feat, num_stages):
    """One-time repack of the PyTorch-layout parameters into GEMM-ready matrices."""
    assert base_filter % 8 == 0 and feat % 8 == 0, \
        "TODO(synk): channel padding for non-multiple-of-8 widths"
    _detect_roll_direction()
    weights = []
    for name in WEIGHT_ORDER:
        leaf, kind = _leaf(raw, name), LAYER_KIND[name]
        if kind == "conv3x3":
            cin = num_channels if name == "feat0" else num_stages * base_filter
            weights.append(_prep_conv3x3(leaf, cin, _ru(cin, 8)))
        elif kind == "conv1x1":
            weights.append(_prep_conv1x1(leaf))
        elif kind == "deconv":
            weights.append(_prep_deconv(leaf))
        else:
            weights.append(_prep_conv_s2(leaf))
    alphas = jnp.stack([jnp.asarray(_leaf(raw, n)["alpha"], jnp.float32)
                        for n in WEIGHT_ORDER[:-1]])
    return {"weights": weights, "alphas": alphas}


# --------------------------------------------------------------------------- params (deterministic)
def _init_conv(key, cin, cout, k):
    w = jax.random.normal(key, (cout, cin, k, k), jnp.float32) * jnp.sqrt(2.0 / (cin * k * k))
    return {"w": w, "b": jnp.zeros((cout,), jnp.float32), "alpha": jnp.float32(0.25)}


def _init_deconv(key, cin, cout, k):
    w = jax.random.normal(key, (cin, cout, k, k), jnp.float32) * jnp.sqrt(2.0 / (cout * k * k))
    return {"w": w, "b": jnp.zeros((cout,), jnp.float32), "alpha": jnp.float32(0.25)}


def init_net(key, num_channels, base_filter, feat, num_stages):
    keys = iter(jax.random.split(key, 64))
    bf, k = base_filter, KERNEL

    def up():
        return {"up1": _init_deconv(next(keys), bf, bf, k),
                "up2": _init_conv(next(keys), bf, bf, k),
                "up3": _init_deconv(next(keys), bf, bf, k)}

    def down():
        return {"down1": _init_conv(next(keys), bf, bf, k),
                "down2": _init_deconv(next(keys), bf, bf, k),
                "down3": _init_conv(next(keys), bf, bf, k)}

    return {
        "feat0": _init_conv(next(keys), num_channels, feat, 3),
        "feat1": _init_conv(next(keys), feat, bf, 1),
        "up1": up(), "down1": down(), "up2": up(),
        "down2": {"conv": _init_conv(next(keys), 2 * bf, bf, 1), **down()},
        "up3": {"conv": _init_conv(next(keys), 2 * bf, bf, 1), **up()},
        "output_conv": _init_conv(next(keys), num_stages * bf, num_channels, 3),
    }


# --------------------------------------------------------------------------- dense reference
def _ref_conv(p, x, stride, pad, act=True):
    y = jax.lax.conv_general_dilated(
        x, p["w"], (stride, stride), [(pad, pad), (pad, pad)],
        dimension_numbers=("NCHW", "OIHW", "NCHW"), precision=jax.lax.Precision.HIGHEST)
    y = y + p["b"][None, :, None, None]
    return jnp.where(y > 0, y, p["alpha"] * y) if act else y


def _ref_deconv(p, x, stride, pad):
    k = p["w"].shape[2]
    w = jnp.flip(jnp.transpose(p["w"], (1, 0, 2, 3)), (2, 3))
    y = jax.lax.conv_general_dilated(
        x, w, (1, 1), [(k - 1 - pad, k - 1 - pad)] * 2, lhs_dilation=(stride, stride),
        dimension_numbers=("NCHW", "OIHW", "NCHW"), precision=jax.lax.Precision.HIGHEST)
    y = y + p["b"][None, :, None, None]
    return jnp.where(y > 0, y, p["alpha"] * y)


def ref_forward(raw, x, *, num_stages):
    def up(P, v):
        h0 = _ref_deconv(P["up1"], v, STRIDE, PAD)
        l0 = _ref_conv(P["up2"], h0, STRIDE, PAD)
        h1 = _ref_deconv(P["up3"], l0 - v, STRIDE, PAD)
        return h1 + h0

    def down(P, v):
        l0 = _ref_conv(P["down1"], v, STRIDE, PAD)
        h0 = _ref_deconv(P["down2"], l0, STRIDE, PAD)
        l1 = _ref_conv(P["down3"], h0 - v, STRIDE, PAD)
        return l1 + l0

    v = _ref_conv(raw["feat0"], x, 1, 1)
    l = _ref_conv(raw["feat1"], v, 1, 0)
    results = []
    for _ in range(num_stages):
        h1 = up(raw["up1"], l)
        l1 = down(raw["down1"], h1)
        h2 = up(raw["up2"], l1)
        concat_h = jnp.concatenate([h2, h1], axis=1)
        l = down(raw["down2"], _ref_conv(raw["down2"]["conv"], concat_h, 1, 0))
        concat_l = jnp.concatenate([l, l1], axis=1)
        h = up(raw["up3"], _ref_conv(raw["up3"]["conv"], concat_l, 1, 0))
        results.append(h)
    return _ref_conv(raw["output_conv"], jnp.concatenate(results, axis=1), 1, 1, act=False)


if __name__ == "__main__":
    # Net(num_channels=3, base_filter=8, feat=16, num_stages=2, scale_factor=2)
    num_channels, base_filter, feat, num_stages = 3, 8, 16, 2

    key = jax.random.PRNGKey(0)
    kp, kx = jax.random.split(key)
    raw = init_net(kp, num_channels, base_filter, feat, num_stages)
    params = prepare_params(raw, num_channels=num_channels, base_filter=base_filter,
                            feat=feat, num_stages=num_stages)
    x = jax.random.normal(kx, (2, num_channels, 8, 8), jnp.float32)

    fwd = jax.jit(functools.partial(net_forward, num_stages=num_stages,
                                    num_channels=num_channels, base_filter=base_filter))
    y = fwd(params, x)
    jax.block_until_ready(y)
    assert y.shape == (2, num_channels, 16, 16), y.shape
    assert y.dtype == jnp.float32
    assert bool(jnp.all(jnp.isfinite(y)))

    # Validate against a dense lax.conv reference of the PyTorch module.
    y_ref = jax.jit(functools.partial(ref_forward, num_stages=num_stages))(raw, x)
    y_ref = jax.block_until_ready(y_ref)
    rel = float(jnp.max(jnp.abs(y - y_ref))) / max(float(jnp.max(jnp.abs(y_ref))), 1e-6)
    assert rel < 1e-1, f"kernel/reference mismatch: rel={rel}"
    print("KERNEL_OK")
</pallas_src>

<mosaic_0001>
module attributes {stable_mosaic.version = 11 : i64} {
  func.func @k(%arg0: memref<8x128xf32, #tpu.memory_space<vmem>>, %arg1: memref<8x128xf32, #tpu.memory_space<vmem>>) attributes {dimension_semantics = [], scalar_prefetch = 0 : i64, scratch_operands = 0 : i64, tpu.core_type = #tpu.core_type<tc>} {
    %c0 = arith.constant 0 : index
    %c0_0 = arith.constant 0 : index
    %0 = vector.load %arg0[%c0, %c0_0] : memref<8x128xf32, #tpu.memory_space<vmem>>, vector<8x128xf32>
    %c1_i32 = arith.constant 1 : i32
    %1 = tpu.dynamic_rotate %0 by %c1_i32 dim 1 : vector<8x128xf32>, i32 -> vector<8x128xf32>
    %c0_1 = arith.constant 0 : index
    %c0_2 = arith.constant 0 : index
    %2 = vector.load %arg1[%c0_1, %c0_2] : memref<8x128xf32, #tpu.memory_space<vmem>>, vector<8x128xf32>
    tpu.vector_store %arg1[%c0_1, %c0_2], %1 {strides = array<i32>} : memref<8x128xf32, #tpu.memory_space<vmem>>, vector<8x128xf32>,
    return
  }
}

</mosaic_0001>

<bundles_post_ra>
// kernel: tpu_custom_call.1
= control target key start
LH: loop header
LB: loop body
LE: loop exit
PB: predicated region body
PF: predicated region fallthrough
CT: control target
= control target key end

     0   :  { %6 = vsyncpa [#allocation3], 0  ;;  %s118_s0 = inlined_call_operand.hbm [shape: f32[8,128], index: 0, kind: input, shape index: {}]   ;;  %s119_s1 = inlined_call_operand.hbm [shape: f32[8,128], index: 1, kind: output, shape index: {}]  }
   0x1   :  { %7 = vsyncpa [#allocation4], 0  ;;  %s13_s8 = sshll.u32 %s118_s0, 4  ;;  %s99_s9 = smov [#allocation2]   ;;  %s14_s8 = int_to_ptr.hbm [resolvable:$true] %s13_s8 }
   0x2   :  { %s15_s10 = sshll.u32 %s99_s9, 4  ;;  %s16_s10 = int_to_ptr.vmem [resolvable:$true] %s15_s10 }
   0x3   :  { %18 = dma.hbm_to_vmem [thread:$0]  %s14_s8, 128, %s16_s10, [#allocation3]  }
   0x4   :  { %95 = dma.done.wait [#allocation3], 128  }
   0x5   :  { %96 = vsyncadd [#allocation3], 4294967168  ;;  %v23_v0 = vld [vmem:[#allocation2] sm:$0xff]  ;;  %s100_s11 = smov 1   ;;  %s101_s12 = smov [#allocation5]  }
   0x6   :  { %24 = vrot.lane.b32.xlu0 %v23_v0, %s100_s11  ;;  %s32_s13 = sshll.u32 %s101_s12, 4  ;;  %s34_s16 = sshll.u32 %s119_s1, 4  ;;  %s33_s13 = int_to_ptr.vmem [resolvable:$true] %s32_s13  ;;  %s35_s16 = int_to_ptr.hbm [resolvable:$true] %s34_s16 }
  0x78   :  { %v25_v1 = vpop.permute.xlu0 %24 }
  0x79   :  { %26 = vst [vmem:[#allocation5] sm:$0xff] %v25_v1 }
  0x7a   :  { %37 = dma.vmem_to_hbm [thread:$0]  %s33_s13, 128, %s35_s16, [#allocation4]  }
  0x7b   :  { %97 = dma.done.wait [#allocation4], 128  }
  0x7c   :  { %98 = vsyncadd [#allocation4], 4294967168 }
  0x7d   :  { %42 = vsyncpa [#allocation3], 1 }
  0x7e   :  { %43 = vsyncpa [#allocation4], 1 }

</bundles_post_ra>
